<compile_context>
chip_gen: v7x
topology: tpu7x:2x2x1
jax: 0.10.0
libtpu: 0.0.40
codegen_flags: <defaults>
</compile_context>

<pallas_src>
import jax
import jax.numpy as jnp
import numpy as np
from jax.experimental import pallas as pl
from jax.experimental.pallas import tpu as pltpu


def _round_up(a, b):
    return (a + b - 1) // b * b


def _avgpool_matmul_kernel(x_ref, p_ref, o_ref):
    # One MXU contraction computes the whole 2x2 average for this row tile.
    o_ref[...] = jnp.dot(
        x_ref[...], p_ref[...], preferred_element_type=jnp.float32
    ).astype(o_ref.dtype)


def avgpool2x2_pallas(x):
    """AvgPool2d(kernel_size=2, stride=2) on NCHW input via a Pallas kernel."""
    N, C, H, W = x.shape
    Ho, Wo = H // 2, W // 2
    assert Ho > 0 and Wo > 0, "spatial dims must be >= 2"
    W2 = 2 * Wo
    # AvgPool2d floors: drop a trailing row/col when H or W is odd.
    xs = x[:, :, : 2 * Ho, :W2]

    R = N * C * Ho          # number of pooled output rows
    K = 2 * W2              # two consecutive image rows per flattened row
    xr = xs.reshape(R, K)   # pure row-major reshape (no transpose, no copy of taps)

    # Constant pooling matrix: output column j averages input taps
    # {2j, 2j+1} of the top row and {W2+2j, W2+2j+1} of the bottom row.
    col = (np.arange(K) % W2) // 2
    pool = (col[:, None] == np.arange(Wo)[None, :]).astype(np.float32) * 0.25
    pool = jnp.asarray(pool)

    # Row tile: large enough to pipeline DMA against the MXU, multiple of 8.
    TR = min(512, _round_up(R, 8))
    grid = (pl.cdiv(R, TR),)

    out_flat = pl.pallas_call(
        _avgpool_matmul_kernel,
        out_shape=jax.ShapeDtypeStruct((R, Wo), x.dtype),
        grid=grid,
        in_specs=[
            pl.BlockSpec((TR, K), lambda i: (i, 0)),   # streamed row tiles
            pl.BlockSpec((K, Wo), lambda i: (0, 0)),   # resident pooling matrix
        ],
        out_specs=pl.BlockSpec((TR, Wo), lambda i: (i, 0)),
        compiler_params=pltpu.CompilerParams(
            dimension_semantics=("parallel",),  # shard row tiles across TCs (v7x)
            vmem_limit_bytes=32 * 1024 * 1024,
        ),
    )(xr, pool)

    return out_flat.reshape(N, C, Ho, Wo)


def downscale_forward(x, scale=2):
    """DownScale.forward — identity when scale == 1, else 2x2 average pool."""
    if scale == 1:
        return x
    return avgpool2x2_pallas(x)


def downscale_reference(x, scale=2):
    """Pure-JAX reference (no Pallas) for correctness check."""
    if scale == 1:
        return x
    N, C, H, W = x.shape
    Ho, Wo = H // 2, W // 2
    xs = x[:, :, : 2 * Ho, : 2 * Wo]
    return xs.reshape(N, C, Ho, 2, Wo, 2).mean(axis=(3, 5))


if __name__ == "__main__":
    key = jax.random.PRNGKey(0)
    k1, k2, k3 = jax.random.split(key, 3)

    # case 1: canonical small shape
    x1 = jax.random.normal(k1, (2, 4, 16, 16), jnp.float32)
    out1 = jax.block_until_ready(downscale_forward(x1, scale=2))
    ref1 = jax.block_until_ready(downscale_reference(x1, scale=2))
    np.testing.assert_allclose(np.asarray(out1), np.asarray(ref1), rtol=1e-5, atol=1e-5)

    # case 2: larger shape -> multi-step grid with a ragged last row tile
    x2 = jax.random.normal(k2, (2, 8, 66, 32), jnp.float32)
    out2 = jax.block_until_ready(downscale_forward(x2, scale=2))
    ref2 = jax.block_until_ready(downscale_reference(x2, scale=2))
    np.testing.assert_allclose(np.asarray(out2), np.asarray(ref2), rtol=1e-5, atol=1e-5)

    # case 3: odd spatial dims (AvgPool2d floor behaviour)
    x3 = jax.random.normal(k3, (1, 3, 17, 15), jnp.float32)
    out3 = jax.block_until_ready(downscale_forward(x3, scale=2))
    ref3 = jax.block_until_ready(downscale_reference(x3, scale=2))
    np.testing.assert_allclose(np.asarray(out3), np.asarray(ref3), rtol=1e-5, atol=1e-5)

    # case 4: scale == 1 is the identity
    out4 = jax.block_until_ready(downscale_forward(x1, scale=1))
    np.testing.assert_allclose(np.asarray(out4), np.asarray(x1))

    print("KERNEL_OK")
</pallas_src>

<mosaic_0001>
module attributes {stable_mosaic.version = 11 : i64} {
  func.func @_avgpool_matmul_kernel(%arg0: i32, %arg1: memref<64x32xf32, #tpu.memory_space<vmem>>, %arg2: memref<32x8xf32, #tpu.memory_space<vmem>>, %arg3: memref<64x8xf32, #tpu.memory_space<vmem>>) attributes {dimension_semantics = [#tpu.dimension_semantics<parallel>], iteration_bounds = array<i64: 1>, scalar_prefetch = 0 : i64, scratch_operands = 0 : i64, tpu.core_type = #tpu.core_type<tc>, window_params = [{transform_indices = @transform_0, window_bounds = array<i64: 64, 32>}, {pipeline_mode = #tpu.pipeline_mode<synchronous>, transform_indices = @transform_1, window_bounds = array<i64: 32, 8>}, {transform_indices = @transform_2, window_bounds = array<i64: 64, 8>}]} {
    %c0 = arith.constant 0 : index
    %c0_0 = arith.constant 0 : index
    %0 = vector.load %arg1[%c0, %c0_0] : memref<64x32xf32, #tpu.memory_space<vmem>>, vector<64x32xf32>
    %c0_1 = arith.constant 0 : index
    %c0_2 = arith.constant 0 : index
    %1 = vector.load %arg2[%c0_1, %c0_2] : memref<32x8xf32, #tpu.memory_space<vmem>>, vector<32x8xf32>
    %cst = arith.constant dense<0.000000e+00> : vector<64x8xf32>
    %2 = tpu.matmul %0, %1, %cst {dimension_numbers = #tpu.dot_dimension_numbers<[1], [0], [0], [1], [0, 0, 1, 1], [], []>} : vector<64x32xf32>, vector<32x8xf32>, vector<64x8xf32> -> vector<64x8xf32>
    %c0_3 = arith.constant 0 : index
    %c0_4 = arith.constant 0 : index
    %3 = vector.load %arg3[%c0_3, %c0_4] : memref<64x8xf32, #tpu.memory_space<vmem>>, vector<64x8xf32>
    tpu.vector_store %arg3[%c0_3, %c0_4], %2 {strides = array<i32>} : memref<64x8xf32, #tpu.memory_space<vmem>>, vector<64x8xf32>,
    return
  }
  func.func @transform_0(%arg0: i32) -> (i32, i32) {
    %c0_i32 = arith.constant 0 : i32
    %c0_i32_0 = arith.constant 0 : i32
    return %arg0, %c0_i32 : i32, i32
  }
  func.func @transform_1(%arg0: i32) -> (i32, i32) {
    %c0_i32 = arith.constant 0 : i32
    %c0_i32_0 = arith.constant 0 : i32
    %c0_i32_1 = arith.constant 0 : i32
    return %c0_i32, %c0_i32_0 : i32, i32
  }
  func.func @transform_2(%arg0: i32) -> (i32, i32) {
    %c0_i32 = arith.constant 0 : i32
    %c0_i32_0 = arith.constant 0 : i32
    return %arg0, %c0_i32 : i32, i32
  }
}

</mosaic_0001>

<bundles_post_ra>
// kernel: tpu_custom_call.1
= control target key start
LH: loop header
LB: loop body
LE: loop exit
PB: predicated region body
PF: predicated region fallthrough
CT: control target
= control target key end

     0   :  { %vm23_vm0 = vcmask 261120   ;;  %vm153_vm1 = vcmask 64512   ;;  %s309_s1 = inlined_call_operand.vmem [shape: f32[32,8], index: 1, kind: input, shape index: {}]   ;;  %s310_s0 = inlined_call_operand.vmem [shape: f32[64,32], index: 0, kind: input, shape index: {}]   ;;  %s311_s2 = inlined_call_operand.vmem [shape: f32[64,8], index: 2, kind: output, shape index: {}]  }
   0x1   :  { %v19_v0 = vld [vmem:[%s309_s1] sm:$0xff]  ;;  %v20_v1 = vld [vmem:[%s309_s1 + $0x8] sm:$0xff]  ;;  %v21_v2 = vld [vmem:[%s309_s1 + $0x10] sm:$0xff] }
   0x2   :  { %v206_v3 = vpack.c.bf16 %v20_v1, %v19_v0  ;;  %v22_v4 = vld [vmem:[%s309_s1 + $0x18] sm:$0xff]  ;;  %v11_v5 = vld [vmem:[%s310_s0] sm:$0xff]  ;;  %v12_v8 = vld [vmem:[%s310_s0 + $0x8] sm:$0xff] }
   0x3   :  { %v15_v6 = vld [vmem:[%s310_s0 + $0x20] sm:$0xff]  ;;  %v210_v7 = vpack.c.bf16 %v22_v4, %v21_v2  ;;  %194 = vmatprep.mubr.msk.f32.mxu0 %vm23_vm0, %v11_v5  ;;  %v16_v9 = vld [vmem:[%s310_s0 + $0x28] sm:$0xff]  ;;  %v13_v10 = vld [vmem:[%s310_s0 + $0x10] sm:$0xff] }
   0x4   :  { %200 = vmatprep.mubr.msk.f32.mxu1 %vm23_vm0, %v15_v6  ;;  %207 = vmatprep.subr.bf16.mxu0 %v206_v3  ;;  %v17_v11 = vld [vmem:[%s310_s0 + $0x30] sm:$0xff]  ;;  %v14_v12 = vld [vmem:[%s310_s0 + $0x18] sm:$0xff] }
   0x5   :  { %214 = vmatprep.subr.bf16.mxu1 %v206_v3  ;;  %209 = vmatpush3.bf16.msra.mxu0 %v206_v3  ;;  %v18_v13 = vld [vmem:[%s310_s0 + $0x38] sm:$0xff] }
   0x6   :  { %216 = vmatpush3.bf16.msra.mxu1 %v206_v3  ;;  %211 = vmatprep.subr.bf16.mxu0 %v210_v7 }
   0x7   :  { %215 = vmatprep.subr.bf16.mxu1 %v210_v7 }
   0x9   :  { %213 = vmatpush3.bf16.msra.mxu0 %v210_v7 }
   0xa   :  { %217 = vmatpush3.bf16.msra.mxu1 %v210_v7 }
   0xc   :  { %195 = vmatmul.mubr.msk.f32.vlgmr.msra.gmra.mrb[0].mxu0 %vm23_vm0, %v12_v8 }
   0xd   :  { %201 = vmatmul.mubr.msk.f32.vlgmr.msra.gmra.mrb[0].mxu1 %vm23_vm0, %v16_v9  ;;  %197 = vmatprep.mubr.msk.f32.mxu0 %vm23_vm0, %v13_v10 }
   0xe   :  { %203 = vmatprep.mubr.msk.f32.mxu1 %vm23_vm0, %v17_v11 }
  0x10   :  { %198 = vmatmul.mubr.msk.f32.gmra.mrb[2].mxu0 %vm23_vm0, %v14_v12 }
  0x11   :  { %204 = vmatmul.mubr.msk.f32.gmra.mrb[2].mxu1 %vm23_vm0, %v18_v13 }
  0xdf   :  { %v196_v14 = vpop.f32.mrb[0].mxu0 }
  0xe0   :  { %v202_v15 = vpop.f32.mrb[0].mxu1  ;;  %155 = vst.msk [vmem:[%s311_s2 + $0x8] sm:$0xff] %vm153_vm1, %v196_v14  ;;  %v114_v16 = vpop.f32.mrb[1].mxu0 }
  0xe1   :  { %159 = vst.msk [vmem:[%s311_s2 + $0x28] sm:$0xff] %vm153_vm1, %v202_v15  ;;  %v134_v17 = vpop.f32.mrb[1].mxu1  ;;  %154 = vst.msk [vmem:[%s311_s2] sm:$0xff] %vm153_vm1, %v114_v16 }
  0xe2   :  { %158 = vst.msk [vmem:[%s311_s2 + $0x20] sm:$0xff] %vm153_vm1, %v134_v17 }
  0xe3   :  { %v199_v18 = vpop.f32.mrb[2].mxu0 }
  0xe4   :  { %v205_v19 = vpop.f32.mrb[2].mxu1  ;;  %157 = vst.msk [vmem:[%s311_s2 + $0x18] sm:$0xff] %vm153_vm1, %v199_v18  ;;  %v124_v20 = vpop.f32.mrb[3].mxu0 }
  0xe5   :  { %161 = vst.msk [vmem:[%s311_s2 + $0x38] sm:$0xff] %vm153_vm1, %v205_v19  ;;  %v144_v21 = vpop.f32.mrb[3].mxu1  ;;  %156 = vst.msk [vmem:[%s311_s2 + $0x10] sm:$0xff] %vm153_vm1, %v124_v20 }
  0xe6   :  { %160 = vst.msk [vmem:[%s311_s2 + $0x30] sm:$0xff] %vm153_vm1, %v144_v21 }

</bundles_post_ra>
